<compile_context>
chip_gen: v7x
topology: tpu7x:2x2x1
jax: 0.10.0
libtpu: 0.0.40
codegen_flags: <defaults>
</compile_context>

<pallas_src>
import functools

import jax
import jax.numpy as jnp
from jax.experimental import pallas as pl
from jax.experimental.pallas import tpu as pltpu


def _round_up(x, m):
    return (x + m - 1) // m * m


def _largest_divisor(candidates, n):
    for c in candidates:
        if n % c == 0:
            return c
    return 128


def _i8_to_bf16(a):
    # Two-step convert (s8 -> f32 -> bf16); both steps lower natively and the
    # kernel is HBM-bound, so the extra VPU work is free.
    return a.astype(jnp.float32).astype(jnp.bfloat16)


# -----------------------------------------------------------------------------
# Small-graph fused kernel (single launch): OUT = Â @ relu(Â @ XW1 + b1) @ W2 + b2
#   adj is exact int8 (A+I); xw1 is already column-scaled by D^{-1/2};
#   dinv (NP,1) applies the row-side D^{-1/2}.
# -----------------------------------------------------------------------------
def _gcn_fused_kernel(adj_ref, xw1_ref, b1_ref, w2_ref, b2_ref, dinv_ref, out_ref):
    a = _i8_to_bf16(adj_ref[...])                               # exact (A+I)
    d = dinv_ref[...]                                           # (NP,1) f32
    acc = jnp.dot(a, xw1_ref[...], preferred_element_type=jnp.float32)
    h1 = jnp.maximum(acc * d + b1_ref[...], 0.0)                # relu(Â@XW1 + b1)
    hw2 = jnp.dot(h1.astype(jnp.bfloat16), w2_ref[...],
                  preferred_element_type=jnp.float32)
    hw2 = (hw2 * d).astype(jnp.bfloat16)                        # D^{-1/2} ⊙ (H1@W2)
    out = jnp.dot(a, hw2, preferred_element_type=jnp.float32)
    out_ref[...] = out * d + b2_ref[...]                        # Â@(H1@W2) + b2


# -----------------------------------------------------------------------------
# Stage 1 kernel: HW2_scaled = D^{-1/2} ⊙ (relu(Â @ XW1 + b1) @ W2)
#   grid = (row_tiles, k_tiles); K reduces over Â columns into an f32 accumulator.
# -----------------------------------------------------------------------------
def _gcn_stage1_kernel(adj_ref, xw1_ref, b1_ref, w2_ref, dinv_ref, hw2_ref,
                       acc_ref, *, tk, xw1_resident):
    k = pl.program_id(1)

    @pl.when(k == 0)
    def _init():
        acc_ref[...] = jnp.zeros_like(acc_ref)

    a = _i8_to_bf16(adj_ref[...])
    if xw1_resident:
        xw1 = xw1_ref[pl.ds(pl.multiple_of(k * tk, tk), tk), :]   # slice resident slab
    else:
        xw1 = xw1_ref[...]                                        # streamed (TK,FHP) slab
    acc_ref[...] += jnp.dot(a, xw1, preferred_element_type=jnp.float32)

    @pl.when(k == pl.num_programs(1) - 1)
    def _finalize():
        d = dinv_ref[...]                                         # (TM,1) row-side norm
        h1 = jnp.maximum(acc_ref[...] * d + b1_ref[...], 0.0)     # bias + ReLU in f32
        hw2 = jnp.dot(h1.astype(w2_ref.dtype), w2_ref[...],
                      preferred_element_type=jnp.float32)
        hw2_ref[...] = (hw2 * d).astype(hw2_ref.dtype)            # pre-scale for stage 2


# -----------------------------------------------------------------------------
# Stage 2 kernel: OUT = D^{-1/2} ⊙ ((A+I) @ HW2_scaled) + b2 = Â @ (H1@W2) + b2
# -----------------------------------------------------------------------------
def _gcn_stage2_kernel(adj_ref, hw2_ref, b2_ref, dinv_ref, out_ref,
                       acc_ref, *, tk, hw2_resident):
    k = pl.program_id(1)

    @pl.when(k == 0)
    def _init():
        acc_ref[...] = jnp.zeros_like(acc_ref)

    a = _i8_to_bf16(adj_ref[...])
    if hw2_resident:
        h = hw2_ref[pl.ds(pl.multiple_of(k * tk, tk), tk), :]
    else:
        h = hw2_ref[...]
    acc_ref[...] += jnp.dot(a, h, preferred_element_type=jnp.float32)

    @pl.when(k == pl.num_programs(1) - 1)
    def _finalize():
        out_ref[...] = acc_ref[...] * dinv_ref[...] + b2_ref[...]


def gcn_spatial_forward(x, edge_index, w1, b1, w2, b2,
                        *, fused_threshold=1024, tm=None, tk=None):
    """x: [N, F_in] float32, edge_index: [2, E] int32 (row 0 = src, row 1 = dst)."""
    N, _ = x.shape
    f_hidden = w1.shape[1]
    f_out = w2.shape[1]

    # Padded sizes: only to 128 (never to TK -> no quadratic padding blow-up).
    NP = _round_up(max(N, 1), 128)
    FHP = _round_up(max(f_hidden, 1), 128)
    FOP = _round_up(max(f_out, 1), 128)
    f32, bf16 = jnp.float32, jnp.bfloat16

    # ---- graph glue: degrees (O(E) scatter) + exact int8 (A+I) at padded size ----
    src = edge_index[0].astype(jnp.int32)
    dst = edge_index[1].astype(jnp.int32)
    nodes = jnp.arange(N, dtype=jnp.int32)
    deg = jnp.ones((N,), f32).at[dst].add(1.0)           # self-loop + in-degree
    dinv = jnp.where(deg > 0, jax.lax.rsqrt(deg), 0.0)

    adj_i8 = jnp.zeros((NP, NP), jnp.int8)               # 1 byte/elem HBM stream
    adj_i8 = adj_i8.at[dst, src].add(1)
    adj_i8 = adj_i8.at[nodes, nodes].add(1)

    # XW1 = X @ W1 hoisted (tiny); fold column-side D^{-1/2} into its rows.
    xw1 = (x.astype(f32) @ w1.astype(f32)) * dinv[:, None]
    xw1_p = jnp.zeros((NP, FHP), bf16).at[:N, :f_hidden].set(xw1.astype(bf16))
    w2_p = jnp.zeros((FHP, FOP), bf16).at[:f_hidden, :f_out].set(w2.astype(bf16))
    b1_p = jnp.zeros((1, FHP), f32).at[0, :f_hidden].set(b1.astype(f32))
    b2_p = jnp.zeros((1, FOP), f32).at[0, :f_out].set(b2.astype(f32))
    dinv_p = jnp.zeros((NP, 1), f32).at[:N, 0].set(dinv)

    # ---- per-generation VMEM budget (v7x: 64 MiB, v5e/v6e: 128 MiB) ----
    try:
        vmem_cap = pltpu.get_tpu_info().vmem_capacity_bytes
    except Exception:  # conservative fallback if the query is unavailable
        vmem_cap = 64 * 1024 * 1024
    vmem_limit = int(min(vmem_cap * 3 // 4, 100 * 1024 * 1024))

    # ---- small-graph fast path: one launch, intermediate never leaves VMEM ----
    if NP <= fused_threshold:
        out_p = pl.pallas_call(
            _gcn_fused_kernel,
            out_shape=jax.ShapeDtypeStruct((NP, FOP), f32),
            compiler_params=pltpu.CompilerParams(vmem_limit_bytes=vmem_limit),
        )(adj_i8, xw1_p, b1_p, w2_p, b2_p, dinv_p)
        return out_p[:N, :f_out]

    # ---- general path: two row/K-tiled passes over the int8 Â stream ----
    TM = tm if tm is not None else _largest_divisor((512, 384, 256, 128), NP)
    TK = tk if tk is not None else _largest_divisor(
        (2048, 1536, 1024, 768, 512, 384, 256, 128), NP)

    # Whole-array VMEM residency for the K-slab operands when they fit
    # (factor 2 accounts for the pipeline's default double-buffering).
    xw1_resident = 2 * NP * FHP * 2 <= vmem_limit // 3
    hw2_resident = 2 * NP * FOP * 2 <= vmem_limit // 3

    grid = (NP // TM, NP // TK)
    cparams = pltpu.CompilerParams(
        dimension_semantics=("parallel", "arbitrary"),   # row tiles across TCs
        vmem_limit_bytes=vmem_limit,
    )
    adj_spec = pl.BlockSpec((TM, TK), lambda i, k: (i, k))
    dinv_spec = pl.BlockSpec((TM, 1), lambda i, k: (i, 0))
    xw1_spec = (pl.BlockSpec((NP, FHP), lambda i, k: (0, 0)) if xw1_resident
                else pl.BlockSpec((TK, FHP), lambda i, k: (k, 0)))
    hw2_spec = (pl.BlockSpec((NP, FOP), lambda i, k: (0, 0)) if hw2_resident
                else pl.BlockSpec((TK, FOP), lambda i, k: (k, 0)))

    # stage 1: HW2_scaled = D^{-1/2} ⊙ (relu(Â @ XW1 + b1) @ W2)   (bf16)
    hw2_p = pl.pallas_call(
        functools.partial(_gcn_stage1_kernel, tk=TK, xw1_resident=xw1_resident),
        out_shape=jax.ShapeDtypeStruct((NP, FOP), bf16),
        grid=grid,
        in_specs=[
            adj_spec,                                     # int8 Â row/col tile
            xw1_spec,                                     # XW1 (resident or K-slab)
            pl.BlockSpec((1, FHP), lambda i, k: (0, 0)),  # b1 (resident)
            pl.BlockSpec((FHP, FOP), lambda i, k: (0, 0)),# W2 (resident)
            dinv_spec,                                    # row-side D^{-1/2}
        ],
        out_specs=pl.BlockSpec((TM, FOP), lambda i, k: (i, 0)),
        scratch_shapes=[pltpu.VMEM((TM, FHP), jnp.float32)],
        compiler_params=cparams,
        cost_estimate=pl.CostEstimate(
            flops=2 * NP * NP * FHP + 2 * NP * FHP * FOP,
            transcendentals=0,
            bytes_accessed=NP * NP + 2 * NP * FHP + 2 * FHP * FOP + 2 * NP * FOP,
        ),
    )(adj_i8, xw1_p, b1_p, w2_p, dinv_p)

    # stage 2: OUT = Â @ (H1 @ W2) + b2
    out_p = pl.pallas_call(
        functools.partial(_gcn_stage2_kernel, tk=TK, hw2_resident=hw2_resident),
        out_shape=jax.ShapeDtypeStruct((NP, FOP), f32),
        grid=grid,
        in_specs=[
            adj_spec,
            hw2_spec,
            pl.BlockSpec((1, FOP), lambda i, k: (0, 0)),
            dinv_spec,
        ],
        out_specs=pl.BlockSpec((TM, FOP), lambda i, k: (i, 0)),
        scratch_shapes=[pltpu.VMEM((TM, FOP), jnp.float32)],
        compiler_params=cparams,
        cost_estimate=pl.CostEstimate(
            flops=2 * NP * NP * FOP,
            transcendentals=0,
            bytes_accessed=NP * NP + 2 * NP * FOP + 4 * NP * FOP,
        ),
    )(adj_i8, hw2_p, b2_p, dinv_p)

    return out_p[:N, :f_out]


def _reference_forward(x, edge_index, w1, b1, w2, b2):
    """Pure-JAX f32 reference of GCNSpatial for correctness checking."""
    N = x.shape[0]
    src, dst = edge_index[0], edge_index[1]
    a = jnp.zeros((N, N), jnp.float32).at[dst, src].add(1.0)
    a = a + jnp.eye(N, dtype=jnp.float32)
    deg = jnp.sum(a, axis=1)
    dinv = jnp.where(deg > 0, 1.0 / jnp.sqrt(deg), 0.0)
    adj = a * dinv[:, None] * dinv[None, :]
    h1 = jnp.maximum(adj @ (x @ w1) + b1[None, :], 0.0)
    return adj @ (h1 @ w2) + b2[None, :]


def _ring_edge_index(n):
    nodes = jnp.arange(n, dtype=jnp.int32)
    src = jnp.concatenate([nodes, (nodes + 1) % n])
    dst = jnp.concatenate([(nodes + 1) % n, nodes])
    return jnp.stack([src, dst], axis=0)  # [2, 2n]


if __name__ == "__main__":
    # Module config: GCNSpatial(in_channels=1, out_channels=4)
    IN_C, OUT_C = 1, 4

    key = jax.random.PRNGKey(0)
    kx1, kx2, kw1, kb1, kw2, kb2 = jax.random.split(key, 6)

    # GCNConv params: conv1 W1 [in_c,out_c], b1 [out_c]; conv2 W2 [out_c,out_c], b2 [out_c]
    w1 = jax.random.normal(kw1, (IN_C, OUT_C), dtype=jnp.float32) / jnp.sqrt(IN_C)
    b1 = 0.1 * jax.random.normal(kb1, (OUT_C,), dtype=jnp.float32)
    w2 = jax.random.normal(kw2, (OUT_C, OUT_C), dtype=jnp.float32) / jnp.sqrt(OUT_C)
    b2 = 0.1 * jax.random.normal(kb2, (OUT_C,), dtype=jnp.float32)

    # ---- test 1: shipped config (N=16) -> fused single-launch fast path ----
    N1 = 16
    x1 = jax.random.normal(kx1, (N1, IN_C), dtype=jnp.float32)
    ei1 = _ring_edge_index(N1)
    out1 = jax.block_until_ready(gcn_spatial_forward(x1, ei1, w1, b1, w2, b2))
    ref1 = _reference_forward(x1, ei1, w1, b1, w2, b2)
    assert out1.shape == (N1, OUT_C)
    assert jnp.allclose(out1, ref1, atol=3e-2, rtol=3e-2), "fused path mismatch"

    # ---- test 2: force the tiled two-stage path (small NP, grid=(3,3)) ----
    N2 = 300  # NP=384; tm=tk=128 exercises K-accumulation + resident slab slicing
    x2 = jax.random.normal(kx2, (N2, IN_C), dtype=jnp.float32)
    ei2 = _ring_edge_index(N2)
    out2 = jax.block_until_ready(
        gcn_spatial_forward(x2, ei2, w1, b1, w2, b2,
                            fused_threshold=0, tm=128, tk=128))
    ref2 = _reference_forward(x2, ei2, w1, b1, w2, b2)
    assert out2.shape == (N2, OUT_C)
    assert jnp.allclose(out2, ref2, atol=3e-2, rtol=3e-2), "tiled path mismatch"

    print("KERNEL_OK")
</pallas_src>

<mosaic_0001>
module attributes {stable_mosaic.version = 11 : i64} {
  func.func @_gcn_fused_kernel(%arg0: memref<128x128xi8, #tpu.memory_space<vmem>>, %arg1: memref<128x128xbf16, #tpu.memory_space<vmem>>, %arg2: memref<1x128xf32, #tpu.memory_space<vmem>>, %arg3: memref<128x128xbf16, #tpu.memory_space<vmem>>, %arg4: memref<1x128xf32, #tpu.memory_space<vmem>>, %arg5: memref<128x1xf32, #tpu.memory_space<vmem>>, %arg6: memref<128x128xf32, #tpu.memory_space<vmem>>) attributes {dimension_semantics = [], scalar_prefetch = 0 : i64, scratch_operands = 0 : i64, tpu.core_type = #tpu.core_type<tc>} {
    %c0 = arith.constant 0 : index
    %c0_0 = arith.constant 0 : index
    %0 = vector.load %arg0[%c0, %c0_0] : memref<128x128xi8, #tpu.memory_space<vmem>>, vector<128x128xi8>
    %1 = arith.sitofp %0 : vector<128x128xi8> to vector<128x128xf32>
    %2 = arith.truncf %1 : vector<128x128xf32> to vector<128x128xbf16>
    %c0_1 = arith.constant 0 : index
    %c0_2 = arith.constant 0 : index
    %3 = vector.load %arg5[%c0_1, %c0_2] : memref<128x1xf32, #tpu.memory_space<vmem>>, vector<128x1xf32>
    %c0_3 = arith.constant 0 : index
    %c0_4 = arith.constant 0 : index
    %4 = vector.load %arg1[%c0_3, %c0_4] : memref<128x128xbf16, #tpu.memory_space<vmem>>, vector<128x128xbf16>
    %cst = arith.constant dense<0.000000e+00> : vector<128x128xf32>
    %5 = tpu.matmul %2, %4, %cst {dimension_numbers = #tpu.dot_dimension_numbers<[1], [0], [0], [1], [0, 0, 1, 1], [], []>} : vector<128x128xbf16>, vector<128x128xbf16>, vector<128x128xf32> -> vector<128x128xf32>
    %6 = vector.broadcast %3 : vector<128x1xf32> to vector<128x128xf32>
    %7 = arith.mulf %5, %6 : vector<128x128xf32>
    %c0_5 = arith.constant 0 : index
    %c0_6 = arith.constant 0 : index
    %8 = vector.load %arg2[%c0_5, %c0_6] : memref<1x128xf32, #tpu.memory_space<vmem>>, vector<1x128xf32>
    %9 = vector.broadcast %8 : vector<1x128xf32> to vector<128x128xf32>
    %10 = arith.addf %7, %9 : vector<128x128xf32>
    %cst_7 = arith.constant 0.000000e+00 : f32
    %11 = vector.broadcast %cst_7 : f32 to vector<128x128xf32>
    %12 = arith.maximumf %10, %11 : vector<128x128xf32>
    %13 = arith.truncf %12 : vector<128x128xf32> to vector<128x128xbf16>
    %c0_8 = arith.constant 0 : index
    %c0_9 = arith.constant 0 : index
    %14 = vector.load %arg3[%c0_8, %c0_9] : memref<128x128xbf16, #tpu.memory_space<vmem>>, vector<128x128xbf16>
    %cst_10 = arith.constant dense<0.000000e+00> : vector<128x128xf32>
    %15 = tpu.matmul %13, %14, %cst_10 {dimension_numbers = #tpu.dot_dimension_numbers<[1], [0], [0], [1], [0, 0, 1, 1], [], []>} : vector<128x128xbf16>, vector<128x128xbf16>, vector<128x128xf32> -> vector<128x128xf32>
    %16 = vector.broadcast %3 : vector<128x1xf32> to vector<128x128xf32>
    %17 = arith.mulf %15, %16 : vector<128x128xf32>
    %18 = arith.truncf %17 : vector<128x128xf32> to vector<128x128xbf16>
    %cst_11 = arith.constant dense<0.000000e+00> : vector<128x128xf32>
    %19 = tpu.matmul %2, %18, %cst_11 {dimension_numbers = #tpu.dot_dimension_numbers<[1], [0], [0], [1], [0, 0, 1, 1], [], []>} : vector<128x128xbf16>, vector<128x128xbf16>, vector<128x128xf32> -> vector<128x128xf32>
    %20 = vector.broadcast %3 : vector<128x1xf32> to vector<128x128xf32>
    %21 = arith.mulf %19, %20 : vector<128x128xf32>
    %c0_12 = arith.constant 0 : index
    %c0_13 = arith.constant 0 : index
    %22 = vector.load %arg4[%c0_12, %c0_13] : memref<1x128xf32, #tpu.memory_space<vmem>>, vector<1x128xf32>
    %23 = vector.broadcast %22 : vector<1x128xf32> to vector<128x128xf32>
    %24 = arith.addf %21, %23 : vector<128x128xf32>
    %c0_14 = arith.constant 0 : index
    %c0_15 = arith.constant 0 : index
    %25 = vector.load %arg6[%c0_14, %c0_15] : memref<128x128xf32, #tpu.memory_space<vmem>>, vector<128x128xf32>
    tpu.vector_store %arg6[%c0_14, %c0_15], %24 {strides = array<i32>} : memref<128x128xf32, #tpu.memory_space<vmem>>, vector<128x128xf32>,
    return
  }
}

</mosaic_0001>

<bundles_post_ra>
// kernel: tpu_custom_call.1
= control target key start
LH: loop header
LB: loop body
LE: loop exit
PB: predicated region body
PF: predicated region fallthrough
CT: control target
= control target key end

     0   :  { %11 = vsyncpa [#allocation3], 0  ;;  %s1292_s0 = inlined_call_operand.hbm [shape: s8[128,128], index: 0, kind: input, shape index: {}]   ;;  %s1293_s1 = inlined_call_operand.vmem [shape: bf16[128,128], index: 1, kind: input, shape index: {}]   ;;  %s1294_s2 = inlined_call_operand.vmem [shape: f32[1,128], index: 2, kind: input, shape index: {}]   ;;  %s1295_s3 = inlined_call_operand.vmem [shape: bf16[128,128], index: 3, kind: input, shape index: {}]   ;;  %s1296_s4 = inlined_call_operand.vmem [shape: f32[1,128], index: 4, kind: input, shape index: {}]   ;;  %s1297_s5 = inlined_call_operand.vmem [shape: f32[128,1], index: 5, kind: input, shape index: {}]   ;;  %s1298_s6 = inlined_call_operand.hbm [shape: f32[128,128], index: 6, kind: output, shape index: {}]  }
   0x1   :  { %12 = vsyncpa [#allocation4], 0  ;;  %s974_s21 = smov [#allocation2]   ;;  %s926_s25 = scalar_lea.hbm %s1292_s0, 512 }
   0x2   :  { %s18_s22 = sshll.u32 %s974_s21, 4  ;;  %p927_p0 = scmp.ne.s32.totalorder %s1292_s0, %s926_s25  ;;  %s19_s22 = int_to_ptr.vmem [resolvable:$true] %s18_s22 }
   0x3   :  { %p930_p1 = scmp.lt.u32.totalorder %s926_s25, %s1292_s0 }
   0x5   :  { %p932_p2 = pnand %p930_p1, %p927_p0 }
   0x7   :  { %935 = shalt.err (!%p932_p2)
}
   0x8   :  { %s936_s30 = scalar_lea.vmem %s19_s22, 512  ;;  %p941_p4 = scmp.lt.s32.totalorder %s19_s22, %s19_s22 }
   0x9   :  { %p937_p3 = scmp.ne.s32.totalorder %s19_s22, %s936_s30  ;;  %p942_p5 = scmp.lt.s32.totalorder %s936_s30, %s936_s30 }
   0xb   :  { %p943_p6 = por %p942_p5, %p941_p4 }
   0xd   :  { %p944_p7 = pnand %p943_p6, %p937_p3 }
   0xf   :  { %947 = shalt.err (!%p944_p7)
}
  0x10   :  { %s975_s7 = smov 128   ;;  %s976_s8 = smov 8  }
  0x11   :  { %24 = dma.hbm_to_vmem [thread:$0]  %s1292_s0, 512, %s19_s22, [#allocation3], %s975_s7, %s975_s7, %s976_s8  }
  0x12   :  { %970 = dma.done.wait [#allocation3], 512  }
  0x13   :  { %971 = vsyncadd [#allocation3], 4294966784  ;;  %v977_v0 = vmov 0   ;;  %v910_v1 = vld [vmem:[%s1293_s1] sm:$0xff]   ;;  %v911_v2 = vld [vmem:[%s1293_s1 + $0x8] sm:$0xff]  }
  0x14   :  { %908 = vset.pattern.permute.xlu0 %v977_v0  ;;  %909 = vset.pattern.permute.xlu1 %v977_v0  ;;  %v912_v3 = vld [vmem:[%s1293_s1 + $0x10] sm:$0xff]   ;;  %v913_v4 = vld [vmem:[%s1293_s1 + $0x18] sm:$0xff]   ;;  %v1041_v5 = vld [vmem:[#allocation2] sm:$0xff] }
  0x15   :  { %791 = vmatprep.subr.bf16.mxu0 %v910_v1  ;;  %v43_v6 = vunpack.c.l.s8.bf16 %v1041_v5  ;;  %v51_v7 = vld [vmem:[%s1297_s5] sm:$0xff]  ;;  %v53_v8 = vld [vmem:[%s1297_s5 + $0x10] sm:$0xff]  ;;  %v52_v9 = vld [vmem:[%s1297_s5 + $0x8] sm:$0xff]  ;;  %v44_v28 = vunpack.c.h.s8.bf16 %v1041_v5 }
  0x16   :  { %792 = vmatpush3.bf16.msra.mxu0 %v910_v1  ;;  %230 = vperm.xlu0 %908, %v51_v7   ;;  %v54_v10 = vld [vmem:[%s1297_s5 + $0x18] sm:$0xff]  ;;  %v914_v11 = vld [vmem:[%s1293_s1 + $0x20] sm:$0xff]   ;;  %v915_v12 = vld [vmem:[%s1293_s1 + $0x28] sm:$0xff]  }
  0x17   :  { %793 = vmatprep.subr.bf16.mxu0 %v911_v2  ;;  %240 = vperm.xlu1 %909, %v53_v8   ;;  %v55_v13 = vld [vmem:[%s1297_s5 + $0x20] sm:$0xff]  ;;  %v56_v14 = vld [vmem:[%s1297_s5 + $0x28] sm:$0xff]  ;;  %v57_v15 = vld [vmem:[%s1297_s5 + $0x30] sm:$0xff] }
  0x18   :  { %807 = vmatprep.mubr.bf16.mxu0 %v43_v6  ;;  %v58_v16 = vld [vmem:[%s1297_s5 + $0x38] sm:$0xff]  ;;  %v918_v17 = vld [vmem:[%s1295_s3] sm:$0xff]   ;;  %v916_v18 = vld [vmem:[%s1293_s1 + $0x30] sm:$0xff]  }
  0x19   :  { %823 = vmatprep.subr.bf16.mxu1 %v918_v17  ;;  %v919_v19 = vld [vmem:[%s1295_s3 + $0x8] sm:$0xff]   ;;  %v59_v20 = vld [vmem:[%s1297_s5 + $0x40] sm:$0xff]  ;;  %v917_v22 = vld [vmem:[%s1293_s1 + $0x38] sm:$0xff]  }
  0x1a   :  { %794 = vmatpush3.bf16.msra.mxu0 %v911_v2  ;;  %235 = vperm.xlu0 %908, %v52_v9   ;;  %v60_v21 = vld [vmem:[%s1297_s5 + $0x48] sm:$0xff]  ;;  %v920_v23 = vld [vmem:[%s1295_s3 + $0x10] sm:$0xff]   ;;  %v62_v25 = vld [vmem:[%s1297_s5 + $0x58] sm:$0xff] }
  0x1b   :  { %795 = vmatprep.subr.bf16.mxu0 %v912_v3  ;;  %245 = vperm.xlu1 %909, %v54_v10   ;;  %v61_v24 = vld [vmem:[%s1297_s5 + $0x50] sm:$0xff]  ;;  %v1103_v26 = vld [vmem:[#allocation2 + $0x8] sm:$0xff]  ;;  %v921_v27 = vld [vmem:[%s1295_s3 + $0x18] sm:$0xff]  }
  0x1c   :  { %824 = vmatpush3.bf16.msra.mxu1 %v918_v17  ;;  %v45_v29 = vunpack.c.l.s8.bf16 %v1103_v26  ;;  %v63_v30 = vld [vmem:[%s1297_s5 + $0x60] sm:$0xff]  ;;  %v64_v31 = vld [vmem:[%s1297_s5 + $0x68] sm:$0xff]  ;;  %v65_v33 = vld [vmem:[%s1297_s5 + $0x70] sm:$0xff]  ;;  %v46_v36 = vunpack.c.h.s8.bf16 %v1103_v26 }
  0x1d   :  { %825 = vmatprep.subr.bf16.mxu1 %v919_v19  ;;  %v922_v32 = vld [vmem:[%s1295_s3 + $0x20] sm:$0xff]   ;;  %v1126_v34 = vld [vmem:[#allocation2 + $0x10] sm:$0xff]  ;;  %v66_v35 = vld [vmem:[%s1297_s5 + $0x78] sm:$0xff] }
  0x1e   :  { %796 = vmatpush3.bf16.msra.mxu0 %v912_v3  ;;  %250 = vperm.xlu0 %908, %v55_v13   ;;  %v47_v37 = vunpack.c.l.s8.bf16 %v1126_v34  ;;  %v1137_v38 = vld [vmem:[#allocation2 + $0x18] sm:$0xff]  ;;  %v48_v39 = vunpack.c.h.s8.bf16 %v1126_v34  ;;  %v923_v42 = vld [vmem:[%s1295_s3 + $0x28] sm:$0xff]   ;;  %v924_v43 = vld [vmem:[%s1295_s3 + $0x30] sm:$0xff]  }
  0x1f   :  { %797 = vmatprep.subr.bf16.mxu0 %v913_v4  ;;  %255 = vperm.xlu1 %909, %v56_v14   ;;  %v49_v40 = vunpack.c.l.s8.bf16 %v1137_v38  ;;  %v50_v41 = vunpack.c.h.s8.bf16 %v1137_v38  ;;  %v925_v44 = vld [vmem:[%s1295_s3 + $0x38] sm:$0xff]   ;;  %v1176_v53 = vld [vmem:[%s1294_s2] ss:$0 sm:$0xff] }
  0x20   :  { %826 = vmatpush3.bf16.msra.mxu1 %v919_v19  ;;  %v742_v5 = vld [vmem:[%s1296_s4] ss:$0 sm:$0xff]  ;;  %s978_s4 = smov [#allocation5]  }
  0x21   :  { %827 = vmatprep.subr.bf16.mxu1 %v920_v23  ;;  %s713_s28 = sshll.u32 %s978_s4, 4  ;;  %s714_s28 = int_to_ptr.vmem [resolvable:$true] %s713_s28 }
  0x22   :  { %798 = vmatpush3.bf16.msra.mxu0 %v913_v4  ;;  %260 = vperm.xlu0 %908, %v57_v15   ;;  %s948_s29 = scalar_lea.vmem %s714_s28, 2048  ;;  %p953_p9 = scmp.lt.s32.totalorder %s714_s28, %s714_s28 }
  0x23   :  { %799 = vmatprep.subr.bf16.mxu0 %v914_v11  ;;  %265 = vperm.xlu1 %909, %v58_v16   ;;  %p949_p8 = scmp.ne.s32.totalorder %s714_s28, %s948_s29  ;;  %p954_p10 = scmp.lt.s32.totalorder %s948_s29, %s948_s29 }
  0x24   :  { %828 = vmatpush3.bf16.msra.mxu1 %v920_v23 }
  0x25   :  { %829 = vmatprep.subr.bf16.mxu1 %v921_v27  ;;  %p955_p11 = por %p954_p10, %p953_p9 }
  0x26   :  { %800 = vmatpush3.bf16.msra.mxu0 %v914_v11  ;;  %270 = vperm.xlu0 %908, %v59_v20  }
  0x27   :  { %801 = vmatprep.subr.bf16.mxu0 %v915_v12  ;;  %275 = vperm.xlu1 %909, %v60_v21   ;;  %p956_p12 = pnand %p955_p11, %p949_p8 }
  0x28   :  { %830 = vmatpush3.bf16.msra.mxu1 %v921_v27 }
  0x29   :  { %831 = vmatprep.subr.bf16.mxu1 %v922_v32 }
  0x2a   :  { %802 = vmatpush3.bf16.msra.mxu0 %v915_v12  ;;  %280 = vperm.xlu0 %908, %v61_v24  }
  0x2b   :  { %803 = vmatprep.subr.bf16.mxu0 %v916_v18  ;;  %285 = vperm.xlu1 %909, %v62_v25  }
  0x2c   :  { %832 = vmatpush3.bf16.msra.mxu1 %v922_v32 }
  0x2d   :  { %833 = vmatprep.subr.bf16.mxu1 %v923_v42 }
  0x2e   :  { %804 = vmatpush3.bf16.msra.mxu0 %v916_v18  ;;  %290 = vperm.xlu0 %908, %v63_v30  }
  0x2f   :  { %805 = vmatprep.subr.bf16.mxu0 %v917_v22  ;;  %295 = vperm.xlu1 %909, %v64_v31  }
  0x30   :  { %834 = vmatpush3.bf16.msra.mxu1 %v923_v42 }
  0x31   :  { %835 = vmatprep.subr.bf16.mxu1 %v924_v43 }
  0x32   :  { %806 = vmatpush3.bf16.msra.mxu0 %v917_v22  ;;  %300 = vperm.xlu0 %908, %v65_v33  }
  0x33   :  { %305 = vperm.xlu1 %909, %v66_v35  }
  0x34   :  { %836 = vmatpush3.bf16.msra.mxu1 %v924_v43 }
  0x35   :  { %808 = vmatmul.mubr.bf16.vlgmr.msra.gmra.mrb[0].mxu0 %v44_v28  ;;  %837 = vmatprep.subr.bf16.mxu1 %v925_v44 }
  0x36   :  { %811 = vmatprep.mubr.bf16.mxu0 %v45_v29 }
  0x38   :  { %838 = vmatpush3.bf16.msra.mxu1 %v925_v44 }
  0x3d   :  { %812 = vmatmul.mubr.bf16.gmra.mrb[4].mxu0 %v46_v36 }
  0x3e   :  { %815 = vmatprep.mubr.bf16.mxu0 %v47_v37 }
  0x45   :  { %816 = vmatmul.mubr.bf16.gmra.mrb[8].mxu0 %v48_v39 }
  0x46   :  { %819 = vmatprep.mubr.bf16.mxu0 %v49_v40 }
  0x4d   :  { %820 = vmatmul.mubr.bf16.gmra.mrb[12].mxu0 %v50_v41 }
  0x4e   :  { %871 = vmatprep.mubr.bf16.mxu0 %v43_v6 }
  0x95   :  { %v1159_v45 = vpop.permute.xlu0 %230 }
  0x96   :  { %v1161_v46 = vpop.permute.xlu1 %240 }
  0x99   :  { %v1163_v47 = vpop.permute.xlu0 %235 }
  0x9a   :  { %v1165_v48 = vpop.permute.xlu1 %245 }
  0x9d   :  { %v1167_v49 = vpop.permute.xlu0 %250 }
  0x9e   :  { %v1169_v50 = vpop.permute.xlu1 %255 }
  0xa1   :  { %v1171_v51 = vpop.permute.xlu0 %260 }
  0xa2   :  { %v1179_v56 = vpop.permute.xlu1 %265 }
  0xa5   :  { %v1187_v1 = vpop.permute.xlu0 %270 }
  0xa6   :  { %v1190_v6 = vpop.permute.xlu1 %275 }
  0xa9   :  { %v1196_v19 = vpop.permute.xlu0 %280 }
  0xaa   :  { %v1201_v23 = vpop.permute.xlu1 %285 }
  0xad   :  { %v1205_v43 = vpop.permute.xlu0 %290 }
 0x108   :  { %v809_v52 = vpop.f32.mrb[0].mxu0 }
 0x109   :  { %v310_v54 = vmul.f32 %v809_v52, %v1161_v46  ;;  %v165_v55 = vpop.f32.mrb[1].mxu0 }
 0x10a   :  { %v308_v57 = vmul.f32 %v1159_v45, %v165_v55  ;;  %v810_v58 = vpop.f32.mrb[2].mxu0 }
 0x10b   :  { %v333_v59 = vadd.f32 %v1176_v53, %v310_v54  ;;  %v311_v60 = vmul.f32 %v810_v58, %v1165_v48  ;;  %v168_v61 = vpop.f32.mrb[3].mxu0 }
 0x10c   :  { %v309_v62 = vmul.f32 %v1163_v47, %v168_v61  ;;  %v331_v63 = vadd.f32 %v1176_v53, %v308_v57 }
 0x10d   :  { %v334_v0 = vadd.f32 %v1176_v53, %v311_v60  ;;  %v349_v3 = vmax.f32 %v333_v59, 0.0  ;;  %v1210_v59 = vpop.permute.xlu1 %295 }
 0x10e   :  { %v332_v2 = vadd.f32 %v1176_v53, %v309_v62  ;;  %v347_v8 = vmax.f32 %v331_v63, 0.0 }
 0x10f   :  { %v350_v4 = vmax.f32 %v334_v0, 0.0 }
 0x110   :  { %v813_v7 = vpop.f32.mrb[4].mxu0  ;;  %v348_v9 = vmax.f32 %v332_v2, 0.0 }
 0x111   :  { %v314_v10 = vmul.f32 %v813_v7, %v1171_v51  ;;  %v181_v11 = vpop.f32.mrb[5].mxu0  ;;  %v364_v12 = vpack.c.bf16 %v350_v4, %v349_v3  ;;  %v1216_v3 = vpop.permute.xlu0 %300 }
 0x112   :  { %v312_v13 = vmul.f32 %v1167_v49, %v181_v11  ;;  %v814_v14 = vpop.f32.mrb[6].mxu0  ;;  %v363_v15 = vpack.c.bf16 %v348_v9, %v347_v8 }
 0x113   :  { %v337_v16 = vadd.f32 %v1176_v53, %v314_v10  ;;  %v315_v17 = vmul.f32 %v814_v14, %v1179_v56  ;;  %v184_v18 = vpop.f32.mrb[7].mxu0 }
 0x114   :  { %v335_v20 = vadd.f32 %v1176_v53, %v312_v13  ;;  %v313_v21 = vmul.f32 %v1169_v50, %v184_v18  ;;  %839 = vmatprep.mubr.bf16.mxu1 %v363_v15 }
 0x115   :  { %v338_v22 = vadd.f32 %v1176_v53, %v315_v17  ;;  %840 = vmatmul.mubr.bf16.vlgmr.msra.gmra.mrb[0].mxu1 %v364_v12  ;;  %v353_v25 = vmax.f32 %v337_v16, 0.0  ;;  %v1219_v12 = vpop.permute.xlu1 %305 }
 0x116   :  { %v336_v24 = vadd.f32 %v1176_v53, %v313_v21  ;;  %v351_v30 = vmax.f32 %v335_v20, 0.0 }
 0x117   :  { %v354_v27 = vmax.f32 %v338_v22, 0.0 }
 0x118   :  { %v352_v31 = vmax.f32 %v336_v24, 0.0  ;;  %v817_v32 = vpop.f32.mrb[8].mxu0 }
 0x119   :  { %v318_v33 = vmul.f32 %v817_v32, %v1196_v19  ;;  %v197_v35 = vpop.f32.mrb[9].mxu0  ;;  %v366_v42 = vpack.c.bf16 %v354_v27, %v353_v25 }
 0x11a   :  { %v316_v44 = vmul.f32 %v1187_v1, %v197_v35  ;;  %v818_v52 = vpop.f32.mrb[10].mxu0  ;;  %v365_v54 = vpack.c.bf16 %v352_v31, %v351_v30 }
 0x11b   :  { %v341_v55 = vadd.f32 %v1176_v53, %v318_v33  ;;  %v319_v57 = vmul.f32 %v818_v52, %v1201_v23  ;;  %v200_v58 = vpop.f32.mrb[11].mxu0 }
 0x11c   :  { %v339_v60 = vadd.f32 %v1176_v53, %v316_v44  ;;  %v317_v61 = vmul.f32 %v1190_v6, %v200_v58  ;;  %843 = vmatprep.mubr.bf16.mxu1 %v365_v54 }
 0x11d   :  { %v342_v62 = vadd.f32 %v1176_v53, %v319_v57  ;;  %844 = vmatmul.mubr.bf16.gmra.mrb[4].mxu1 %v366_v42  ;;  %v357_v0 = vmax.f32 %v341_v55, 0.0 }
 0x11e   :  { %v340_v63 = vadd.f32 %v1176_v53, %v317_v61  ;;  %v355_v4 = vmax.f32 %v339_v60, 0.0 }
 0x11f   :  { %v358_v2 = vmax.f32 %v342_v62, 0.0 }
 0x120   :  { %v356_v7 = vmax.f32 %v340_v63, 0.0  ;;  %v821_v8 = vpop.f32.mrb[12].mxu0 }
 0x121   :  { %v322_v9 = vmul.f32 %v821_v8, %v1216_v3  ;;  %v213_v10 = vpop.f32.mrb[13].mxu0  ;;  %v368_v11 = vpack.c.bf16 %v358_v2, %v357_v0 }
 0x122   :  { %v320_v13 = vmul.f32 %v1205_v43, %v213_v10  ;;  %v822_v14 = vpop.f32.mrb[14].mxu0  ;;  %v367_v15 = vpack.c.bf16 %v356_v7, %v355_v4 }
 0x123   :  { %v345_v16 = vadd.f32 %v1176_v53, %v322_v9  ;;  %v323_v17 = vmul.f32 %v822_v14, %v1219_v12  ;;  %v216_v18 = vpop.f32.mrb[15].mxu0 }
 0x124   :  { %v343_v20 = vadd.f32 %v1176_v53, %v320_v13  ;;  %v321_v21 = vmul.f32 %v1210_v59, %v216_v18  ;;  %847 = vmatprep.mubr.bf16.mxu1 %v367_v15 }
 0x125   :  { %v346_v22 = vadd.f32 %v1176_v53, %v323_v17  ;;  %848 = vmatmul.mubr.bf16.gmra.mrb[8].mxu1 %v368_v11  ;;  %v361_v25 = vmax.f32 %v345_v16, 0.0 }
 0x126   :  { %v344_v24 = vadd.f32 %v1176_v53, %v321_v21  ;;  %v359_v30 = vmax.f32 %v343_v20, 0.0 }
 0x127   :  { %v362_v27 = vmax.f32 %v346_v22, 0.0 }
 0x128   :  { %v360_v31 = vmax.f32 %v344_v24, 0.0 }
 0x129   :  { %v370_v32 = vpack.c.bf16 %v362_v27, %v361_v25 }
 0x12a   :  { %v369_v33 = vpack.c.bf16 %v360_v31, %v359_v30 }
 0x12c   :  { %851 = vmatprep.mubr.bf16.mxu1 %v369_v33 }
 0x12d   :  { %852 = vmatmul.mubr.bf16.gmra.mrb[12].mxu1 %v370_v32 }
 0x12e   :  { %879 = vmatprep.mubr.bf16.mxu1 %v47_v37 }
 0x1e8   :  { %v841_v35 = vpop.f32.mrb[0].mxu1 }
 0x1e9   :  { %v469_v42 = vpop.f32.mrb[1].mxu1  ;;  %v534_v52 = vmul.f32 %v841_v35, %v1161_v46 }
 0x1ea   :  { %v842_v44 = vpop.f32.mrb[2].mxu1  ;;  %v532_v53 = vmul.f32 %v469_v42, %v1159_v45 }
 0x1eb   :  { %v535_v54 = vmul.f32 %v842_v44, %v1165_v48  ;;  %v472_v55 = vpop.f32.mrb[3].mxu1 }
 0x1ec   :  { %v533_v57 = vmul.f32 %v472_v55, %v1163_v47 }
 0x1ed   :  { %v549_v58 = vpack.c.bf16 %v535_v54, %v534_v52 }
 0x1ee   :  { %v548_v60 = vpack.c.bf16 %v533_v57, %v532_v53 }
 0x1f0   :  { %v845_v61 = vpop.f32.mrb[4].mxu1  ;;  %855 = vmatprep.subr.bf16.mxu0 %v548_v60  ;;  %887 = vmatprep.subr.bf16.mxu1 %v548_v60 }
 0x1f1   :  { %v485_v62 = vpop.f32.mrb[5].mxu1  ;;  %856 = vmatpush3.bf16.msra.mxu0 %v548_v60  ;;  %895 = vmatpush3.bf16.msra.mxu1 %v548_v60  ;;  %v538_v63 = vmul.f32 %v845_v61, %v1171_v51 }
 0x1f2   :  { %v846_v37 = vpop.f32.mrb[6].mxu1  ;;  %857 = vmatprep.subr.bf16.mxu0 %v549_v58  ;;  %888 = vmatprep.subr.bf16.mxu1 %v549_v58  ;;  %v536_v4 = vmul.f32 %v485_v62, %v1167_v49 }
 0x1f3   :  { %v539_v0 = vmul.f32 %v846_v37, %v1179_v56  ;;  %v488_v2 = vpop.f32.mrb[7].mxu1 }
 0x1f4   :  { %v537_v7 = vmul.f32 %v488_v2, %v1169_v50 }
 0x1f5   :  { %v551_v8 = vpack.c.bf16 %v539_v0, %v538_v63  ;;  %858 = vmatpush3.bf16.msra.mxu0 %v549_v58  ;;  %896 = vmatpush3.bf16.msra.mxu1 %v549_v58 }
 0x1f6   :  { %v550_v9 = vpack.c.bf16 %v537_v7, %v536_v4 }
 0x1f8   :  { %v849_v10 = vpop.f32.mrb[8].mxu1  ;;  %859 = vmatprep.subr.bf16.mxu0 %v550_v9  ;;  %889 = vmatprep.subr.bf16.mxu1 %v550_v9 }
 0x1f9   :  { %v501_v11 = vpop.f32.mrb[9].mxu1  ;;  %860 = vmatpush3.bf16.msra.mxu0 %v550_v9  ;;  %897 = vmatpush3.bf16.msra.mxu1 %v550_v9  ;;  %v542_v14 = vmul.f32 %v849_v10, %v1196_v19 }
 0x1fa   :  { %v850_v13 = vpop.f32.mrb[10].mxu1  ;;  %861 = vmatprep.subr.bf16.mxu0 %v551_v8  ;;  %890 = vmatprep.subr.bf16.mxu1 %v551_v8  ;;  %v540_v17 = vmul.f32 %v501_v11, %v1187_v1 }
 0x1fb   :  { %v543_v15 = vmul.f32 %v850_v13, %v1201_v23  ;;  %v504_v16 = vpop.f32.mrb[11].mxu1 }
 0x1fc   :  { %v541_v18 = vmul.f32 %v504_v16, %v1190_v6 }
 0x1fd   :  { %v553_v20 = vpack.c.bf16 %v543_v15, %v542_v14  ;;  %862 = vmatpush3.bf16.msra.mxu0 %v551_v8  ;;  %898 = vmatpush3.bf16.msra.mxu1 %v551_v8 }
 0x1fe   :  { %v552_v21 = vpack.c.bf16 %v541_v18, %v540_v17 }
 0x200   :  { %v853_v22 = vpop.f32.mrb[12].mxu1  ;;  %863 = vmatprep.subr.bf16.mxu0 %v552_v21  ;;  %891 = vmatprep.subr.bf16.mxu1 %v552_v21 }
 0x201   :  { %v517_v24 = vpop.f32.mrb[13].mxu1  ;;  %864 = vmatpush3.bf16.msra.mxu0 %v552_v21  ;;  %899 = vmatpush3.bf16.msra.mxu1 %v552_v21  ;;  %v546_v27 = vmul.f32 %v853_v22, %v1216_v3 }
 0x202   :  { %v854_v25 = vpop.f32.mrb[14].mxu1  ;;  %865 = vmatprep.subr.bf16.mxu0 %v553_v20  ;;  %892 = vmatprep.subr.bf16.mxu1 %v553_v20  ;;  %v544_v32 = vmul.f32 %v517_v24, %v1205_v43 }
 0x203   :  { %v547_v30 = vmul.f32 %v854_v25, %v1219_v12  ;;  %v520_v31 = vpop.f32.mrb[15].mxu1 }
 0x204   :  { %v545_v33 = vmul.f32 %v520_v31, %v1210_v59 }
 0x205   :  { %v555_v35 = vpack.c.bf16 %v547_v30, %v546_v27  ;;  %866 = vmatpush3.bf16.msra.mxu0 %v553_v20  ;;  %900 = vmatpush3.bf16.msra.mxu1 %v553_v20 }
 0x206   :  { %v554_v42 = vpack.c.bf16 %v545_v33, %v544_v32 }
 0x208   :  { %867 = vmatprep.subr.bf16.mxu0 %v554_v42  ;;  %893 = vmatprep.subr.bf16.mxu1 %v554_v42 }
 0x209   :  { %868 = vmatpush3.bf16.msra.mxu0 %v554_v42  ;;  %901 = vmatpush3.bf16.msra.mxu1 %v554_v42 }
 0x20a   :  { %869 = vmatprep.subr.bf16.mxu0 %v555_v35  ;;  %894 = vmatprep.subr.bf16.mxu1 %v555_v35 }
 0x20d   :  { %870 = vmatpush3.bf16.msra.mxu0 %v555_v35  ;;  %902 = vmatpush3.bf16.msra.mxu1 %v555_v35 }
 0x210   :  { %872 = vmatmul.mubr.bf16.vlgmr.msra.gmra.mrb[16].mxu0 %v44_v28  ;;  %880 = vmatmul.mubr.bf16.vlgmr.msra.gmra.mrb[16].mxu1 %v48_v39 }
 0x211   :  { %875 = vmatprep.mubr.bf16.mxu0 %v45_v29  ;;  %883 = vmatprep.mubr.bf16.mxu1 %v49_v40 }
 0x218   :  { %876 = vmatmul.mubr.bf16.gmra.mrb[20].mxu0 %v46_v36  ;;  %884 = vmatmul.mubr.bf16.gmra.mrb[20].mxu1 %v50_v41 }
 0x2e3   :  { %v873_v44 = vpop.f32.mrb[16].mxu0  ;;  %v881_v28 = vpop.f32.mrb[16].mxu1 }
 0x2e4   :  { %v655_v34 = vmul.f32 %v873_v44, %v1161_v46  ;;  %v663_v39 = vmul.f32 %v881_v28, %v1196_v19  ;;  %v590_v29 = vpop.f32.mrb[17].mxu0  ;;  %v622_v52 = vpop.f32.mrb[17].mxu1 }
 0x2e5   :  { %v653_v40 = vmul.f32 %v590_v29, %v1159_v45  ;;  %v661_v26 = vmul.f32 %v622_v52, %v1187_v1  ;;  %v874_v36 = vpop.f32.mrb[18].mxu0  ;;  %v882_v54 = vpop.f32.mrb[18].mxu1 }
 0x2e6   :  { %v678_v38 = vadd.f32 %v742_v5, %v655_v34  ;;  %v686_v41 = vadd.f32 %v742_v5, %v663_v39  ;;  %v656_v55 = vmul.f32 %v874_v36, %v1165_v48  ;;  %v664_v53 = vmul.f32 %v882_v54, %v1201_v23  ;;  %v593_v57 = vpop.f32.mrb[19].mxu0  ;;  %v625_v58 = vpop.f32.mrb[19].mxu1 }
 0x2e7   :  { %v676_v60 = vadd.f32 %v742_v5, %v653_v40  ;;  %v684_v46 = vadd.f32 %v742_v5, %v661_v26  ;;  %v654_v19 = vmul.f32 %v593_v57, %v1163_v47  ;;  %v662_v61 = vmul.f32 %v625_v58, %v1190_v6 }
 0x2e8   :  { %694 = vst [vmem:[#allocation5 + $0x10] sm:$0xff] %v678_v38  ;;  %702 = vst [vmem:[#allocation5 + $0x50] sm:$0xff] %v686_v41  ;;  %v679_v45 = vadd.f32 %v742_v5, %v656_v55  ;;  %v687_v1 = vadd.f32 %v742_v5, %v664_v53 }
 0x2e9   :  { %692 = vst [vmem:[#allocation5] sm:$0xff] %v676_v60  ;;  %700 = vst [vmem:[#allocation5 + $0x40] sm:$0xff] %v684_v46  ;;  %v677_v62 = vadd.f32 %v742_v5, %v654_v19  ;;  %v685_v37 = vadd.f32 %v742_v5, %v662_v61 }
 0x2ea   :  { %695 = vst [vmem:[#allocation5 + $0x18] sm:$0xff] %v679_v45  ;;  %703 = vst [vmem:[#allocation5 + $0x58] sm:$0xff] %v687_v1 }
 0x2eb   :  { %693 = vst [vmem:[#allocation5 + $0x8] sm:$0xff] %v677_v62  ;;  %701 = vst [vmem:[#allocation5 + $0x48] sm:$0xff] %v685_v37  ;;  %v877_v48 = vpop.f32.mrb[20].mxu0  ;;  %v885_v23 = vpop.f32.mrb[20].mxu1 }
 0x2ec   :  { %v659_v63 = vmul.f32 %v877_v48, %v1171_v51  ;;  %v667_v47 = vmul.f32 %v885_v23, %v1216_v3  ;;  %v606_v0 = vpop.f32.mrb[21].mxu0  ;;  %v638_v6 = vpop.f32.mrb[21].mxu1 }
 0x2ed   :  { %v657_v2 = vmul.f32 %v606_v0, %v1167_v49  ;;  %v665_v4 = vmul.f32 %v638_v6, %v1205_v43  ;;  %v878_v7 = vpop.f32.mrb[22].mxu0  ;;  %v886_v8 = vpop.f32.mrb[22].mxu1 }
 0x2ee   :  { %v682_v9 = vadd.f32 %v742_v5, %v659_v63  ;;  %v690_v10 = vadd.f32 %v742_v5, %v667_v47  ;;  %v660_v11 = vmul.f32 %v878_v7, %v1179_v56  ;;  %v668_v13 = vmul.f32 %v886_v8, %v1219_v12  ;;  %v609_v14 = vpop.f32.mrb[23].mxu0  ;;  %v641_v15 = vpop.f32.mrb[23].mxu1 }
 0x2ef   :  { %v680_v51 = vadd.f32 %v742_v5, %v657_v2  ;;  %v688_v3 = vadd.f32 %v742_v5, %v665_v4  ;;  %v658_v16 = vmul.f32 %v609_v14, %v1169_v50  ;;  %v666_v49 = vmul.f32 %v641_v15, %v1210_v59 }
 0x2f0   :  { %698 = vst [vmem:[#allocation5 + $0x30] sm:$0xff] %v682_v9  ;;  %706 = vst [vmem:[#allocation5 + $0x70] sm:$0xff] %v690_v10  ;;  %v683_v43 = vadd.f32 %v742_v5, %v660_v11  ;;  %v691_v17 = vadd.f32 %v742_v5, %v668_v13 }
 0x2f1   :  { %696 = vst [vmem:[#allocation5 + $0x20] sm:$0xff] %v680_v51  ;;  %704 = vst [vmem:[#allocation5 + $0x60] sm:$0xff] %v688_v3  ;;  %v681_v18 = vadd.f32 %v742_v5, %v658_v16  ;;  %v689_v56 = vadd.f32 %v742_v5, %v666_v49 }
 0x2f2   :  { %699 = vst [vmem:[#allocation5 + $0x38] sm:$0xff] %v683_v43  ;;  %707 = vst [vmem:[#allocation5 + $0x78] sm:$0xff] %v691_v17 }
 0x2f3   :  { %697 = vst [vmem:[#allocation5 + $0x28] sm:$0xff] %v681_v18  ;;  %705 = vst [vmem:[#allocation5 + $0x68] sm:$0xff] %v689_v56 }
 0x2f4   :  { %959 = shalt.err (!%p956_p12)
}
 0x2f5   :  { %s960_s10 = scalar_lea.hbm %s1298_s6, 2048 }
 0x2f6   :  { %p961_p13 = scmp.ne.s32.totalorder %s1298_s6, %s960_s10  ;;  %p964_p0 = scmp.lt.u32.totalorder %s960_s10, %s1298_s6 }
 0x2f8   :  { %p966_p1 = pnand %p964_p0, %p961_p13 }
 0x2fa   :  { %969 = shalt.err (!%p966_p1)
}
 0x2fb   :  { %719 = dma.vmem_to_hbm [thread:$0]  %s714_s28, 2048, %s1298_s6, [#allocation4], %s975_s7, %s975_s7, %s976_s8  }
 0x2fc   :  { %972 = dma.done.wait [#allocation4], 2048  }
 0x2fd   :  { %973 = vsyncadd [#allocation4], 4294965248 }
 0x2fe   :  { %723 = vsyncpa [#allocation3], 1 }
 0x2ff   :  { %724 = vsyncpa [#allocation4], 1 }

</bundles_post_ra>
